<compile_context>
chip_gen: v7x
topology: tpu7x:2x2x1
jax: 0.10.0
libtpu: 0.0.40
codegen_flags: <defaults>
</compile_context>

<pallas_src>
import numpy as np
import jax
import jax.numpy as jnp
from jax.experimental import pallas as pl
from jax.experimental.pallas import tpu as pltpu


def _lin2d_kernel(m_ref, x_ref, o_ref):
    # m_ref: [2, 2] f32 in SMEM (the fixed matrix M)
    # x_ref: [2, TILE_B] f32 in VMEM (batch on the lane axis)
    # o_ref: [2, TILE_B] f32 in VMEM
    m00 = m_ref[0, 0]
    m01 = m_ref[0, 1]
    m10 = m_ref[1, 0]
    m11 = m_ref[1, 1]

    x0 = x_ref[0:1, :]                      # [1, TILE_B]
    x1 = x_ref[1:2, :]                      # [1, TILE_B]

    # Mx[i] = M @ x[i]  ->  row r of the transposed output is sum_c M[r,c]*x_c
    o_ref[0:1, :] = m00 * x0 + m01 * x1
    o_ref[1:2, :] = m10 * x0 + m11 * x1


def _round_up(n, m):
    return ((n + m - 1) // m) * m


def lin2d_forward(x, M, *, tile_b=512):
    """x: [B, 2]; M: [2, 2].  Returns Mx (shape [B, 2]) with Mx[i] = M @ x[i]."""
    B, D = x.shape
    assert D == 2 and M.shape == (2, 2)

    # Lane-dense layout: put the batch on the 128-lane axis.
    xt = jnp.transpose(x.astype(jnp.float32))             # [2, B]
    tile_b = min(tile_b, _round_up(B, 128))                # lane tile, multiple of 128
    Bp = _round_up(B, tile_b)
    if Bp != B:
        xt = jnp.pad(xt, ((0, 0), (0, Bp - B)))            # pad batch to tile multiple

    out_t = pl.pallas_call(
        _lin2d_kernel,
        out_shape=jax.ShapeDtypeStruct((2, Bp), jnp.float32),
        grid_spec=pltpu.PrefetchScalarGridSpec(
            num_scalar_prefetch=0,
            grid=(Bp // tile_b,),
            in_specs=[
                # M: tiny, untiled, lives in scalar memory for the whole grid.
                pl.BlockSpec(memory_space=pltpu.MemorySpace.SMEM),
                # x^T tile: [2, TILE_B], batch axis tiled along lanes.
                pl.BlockSpec((2, tile_b), lambda i: (0, i)),
            ],
            out_specs=pl.BlockSpec((2, tile_b), lambda i: (0, i)),
        ),
        compiler_params=pltpu.CompilerParams(
            dimension_semantics=("parallel",),
        ),
    )(M.astype(jnp.float32), xt)

    return jnp.transpose(out_t[:, :B])                     # back to [B, 2]


def _reference(x, M):
    # Mx[i] = M @ x[i]  <=>  x @ M.T
    return x @ M.T


if __name__ == "__main__":
    # Lin2d(x_dim=2, N, dt, init): only x_dim and theta(=dt) matter for forward.
    B = 8
    dt = 0.1
    theta = dt  # TODO(synk): `theta` is undefined in the provided snippet; concretized as dt.

    M = jnp.array(
        [[np.cos(theta), np.sin(theta)],
         [-np.sin(theta), np.cos(theta)]],
        dtype=jnp.float32,
    )

    key = jax.random.PRNGKey(0)
    x = jax.random.normal(key, (B, 2), dtype=jnp.float32)

    Mx = lin2d_forward(x, M)
    jax.block_until_ready(Mx)

    Mx_ref = _reference(x, M)
    assert Mx.shape == (B, 2)
    assert jnp.allclose(Mx, Mx_ref, atol=1e-5, rtol=1e-5)

    # TODO(synk): the torch loop also supports per-sample matrices x[i] of
    # shape [2, K]; only the canonical [B, 2] state layout is kernelized here.
    print("KERNEL_OK")
</pallas_src>

<mosaic_0001>
module attributes {stable_mosaic.version = 11 : i64} {
  func.func @_lin2d_kernel(%arg0: i32, %arg1: memref<2x2xf32, #tpu.memory_space<smem>>, %arg2: memref<2x128xf32, #tpu.memory_space<vmem>>, %arg3: memref<2x128xf32, #tpu.memory_space<vmem>>) attributes {dimension_semantics = [#tpu.dimension_semantics<parallel>], iteration_bounds = array<i64: 1>, scalar_prefetch = 0 : i64, scratch_operands = 0 : i64, tpu.core_type = #tpu.core_type<tc>, window_params = [{transform_indices = @transform_0, window_bounds = array<i64: 2, 2>}, {transform_indices = @transform_1, window_bounds = array<i64: 2, 128>}, {transform_indices = @transform_2, window_bounds = array<i64: 2, 128>}]} {
    %c0 = arith.constant 0 : index
    %c0_0 = arith.constant 0 : index
    %0 = memref.load %arg1[%c0, %c0_0] : memref<2x2xf32, #tpu.memory_space<smem>>
    %c0_1 = arith.constant 0 : index
    %c1 = arith.constant 1 : index
    %1 = memref.load %arg1[%c0_1, %c1] : memref<2x2xf32, #tpu.memory_space<smem>>
    %c1_2 = arith.constant 1 : index
    %c0_3 = arith.constant 0 : index
    %2 = memref.load %arg1[%c1_2, %c0_3] : memref<2x2xf32, #tpu.memory_space<smem>>
    %c1_4 = arith.constant 1 : index
    %c1_5 = arith.constant 1 : index
    %3 = memref.load %arg1[%c1_4, %c1_5] : memref<2x2xf32, #tpu.memory_space<smem>>
    %c0_6 = arith.constant 0 : index
    %c0_7 = arith.constant 0 : index
    %4 = vector.load %arg2[%c0_6, %c0_7] : memref<2x128xf32, #tpu.memory_space<vmem>>, vector<1x128xf32>
    %c1_8 = arith.constant 1 : index
    %c0_9 = arith.constant 0 : index
    %5 = vector.load %arg2[%c1_8, %c0_9] : memref<2x128xf32, #tpu.memory_space<vmem>>, vector<1x128xf32>
    %6 = vector.broadcast %0 : f32 to vector<1x128xf32>
    %7 = arith.mulf %6, %4 : vector<1x128xf32>
    %8 = vector.broadcast %1 : f32 to vector<1x128xf32>
    %9 = arith.mulf %8, %5 : vector<1x128xf32>
    %10 = arith.addf %7, %9 : vector<1x128xf32>
    %c0_10 = arith.constant 0 : index
    %c0_11 = arith.constant 0 : index
    %11 = vector.load %arg3[%c0_10, %c0_11] : memref<2x128xf32, #tpu.memory_space<vmem>>, vector<1x128xf32>
    tpu.vector_store %arg3[%c0_10, %c0_11], %10 {strides = array<i32>} : memref<2x128xf32, #tpu.memory_space<vmem>>, vector<1x128xf32>,
    %12 = vector.broadcast %2 : f32 to vector<1x128xf32>
    %13 = arith.mulf %12, %4 : vector<1x128xf32>
    %14 = vector.broadcast %3 : f32 to vector<1x128xf32>
    %15 = arith.mulf %14, %5 : vector<1x128xf32>
    %16 = arith.addf %13, %15 : vector<1x128xf32>
    %c1_12 = arith.constant 1 : index
    %c0_13 = arith.constant 0 : index
    %17 = vector.load %arg3[%c1_12, %c0_13] : memref<2x128xf32, #tpu.memory_space<vmem>>, vector<1x128xf32>
    tpu.vector_store %arg3[%c1_12, %c0_13], %16 {strides = array<i32>} : memref<2x128xf32, #tpu.memory_space<vmem>>, vector<1x128xf32>,
    return
  }
  func.func @transform_0(%arg0: i32) -> (i32, i32) {
    %c0_i32 = arith.constant 0 : i32
    %c0_i32_0 = arith.constant 0 : i32
    %c0_i32_1 = arith.constant 0 : i32
    return %c0_i32, %c0_i32_0 : i32, i32
  }
  func.func @transform_1(%arg0: i32) -> (i32, i32) {
    %c0_i32 = arith.constant 0 : i32
    %c0_i32_0 = arith.constant 0 : i32
    return %c0_i32, %arg0 : i32, i32
  }
  func.func @transform_2(%arg0: i32) -> (i32, i32) {
    %c0_i32 = arith.constant 0 : i32
    %c0_i32_0 = arith.constant 0 : i32
    return %c0_i32, %arg0 : i32, i32
  }
}

</mosaic_0001>

<bundles_post_ra>
// kernel: tpu_custom_call.1
= control target key start
LH: loop header
LB: loop body
LE: loop exit
PB: predicated region body
PF: predicated region fallthrough
CT: control target
= control target key end

     0   :  { %7 = vsyncpa [#allocation4], 0  ;;  %s144_s0 = inlined_call_operand.hbm [shape: f32[2,2], index: 0, kind: input, shape index: {}]   ;;  %s145_s1 = inlined_call_operand.vmem [shape: f32[2,128], index: 1, kind: input, shape index: {}]   ;;  %s146_s2 = inlined_call_operand.hbm [shape: f32[2,128], index: 2, kind: output, shape index: {}]  }
   0x1   :  { %8 = vsyncpa [#allocation3], 0  ;;  %s61_s11 = scalar_lea.hbm %s144_s0, 32 }
   0x2   :  { %p62_p0 = scmp.ne.s32.totalorder %s144_s0, %s61_s11  ;;  %p65_p1 = scmp.lt.u32.totalorder %s61_s11, %s144_s0 }
   0x4   :  { %p67_p2 = pnand %p65_p1, %p62_p0 }
   0x6   :  { %70 = shalt.err (!%p67_p2)
}
   0x7   :  { %s97_s16 = smov [#allocation2]  }
   0x8   :  { %16 = dma.hbm_to_smem %s144_s0, 32, %s97_s16, [#allocation4]  }
   0x9   :  { %93 = dma.done.wait [#allocation4], 32  }
   0xa   :  { %94 = vsyncadd [#allocation4], 4294967264 }
   0xb   :  { %22 = sfence }
   0xc   :  { %s23_s19 = sld [smem:[#allocation2]]  ;;  %s56_s20 = sld [smem:[#allocation2 + $0x1]]  ;;  %v27_v0 = vld [vmem:[%s145_s1] sm:$0x1]  ;;  %v28_v1 = vld [vmem:[%s145_s1 + $0x1] sm:$0x1] }
   0xd   :  { %s57_s21 = sld [smem:[#allocation2 + $0x80]]  ;;  %s58_s22 = sld [smem:[#allocation2 + $0x81]] }
   0xe   :  { %s98_s0 = smov [#allocation5]  }
   0xf   :  { %s47_s27 = sshll.u32 %s98_s0, 4  ;;  %s48_s27 = int_to_ptr.vmem [resolvable:$true] %s47_s27 }
  0x10   :  { %s71_s28 = scalar_lea.vmem %s48_s27, 32  ;;  %p76_p4 = scmp.lt.s32.totalorder %s48_s27, %s48_s27 }
  0x11   :  { %p72_p3 = scmp.ne.s32.totalorder %s48_s27, %s71_s28  ;;  %p77_p5 = scmp.lt.s32.totalorder %s71_s28, %s71_s28 }
  0x12   :  { %v29_v2 = vstv %s23_s19  ;;  %v31_v3 = vstv %s56_s20 }
  0x13   :  { %v30_v4 = vmul.f32 %v29_v2, %v27_v0  ;;  %v32_v5 = vmul.f32 %v31_v3, %v28_v1  ;;  %v35_v6 = vstv %s57_s21  ;;  %v37_v7 = vstv %s58_s22  ;;  %p78_p6 = por %p77_p5, %p76_p4 }
  0x14   :  { %v36_v8 = vmul.f32 %v35_v6, %v27_v0  ;;  %v38_v9 = vmul.f32 %v37_v7, %v28_v1 }
  0x15   :  { %v33_v10 = vadd.f32 %v32_v5, %v30_v4  ;;  %p79_p7 = pnand %p78_p6, %p72_p3 }
  0x16   :  { %v39_v11 = vadd.f32 %v38_v9, %v36_v8 }
  0x17   :  { %34 = vst [vmem:[#allocation5] sm:$0x1] %v33_v10 }
  0x18   :  { %40 = vst [vmem:[#allocation5 + $0x1] sm:$0x1] %v39_v11 }
  0x19   :  { %82 = shalt.err (!%p79_p7)
}
  0x1a   :  { %s83_s30 = scalar_lea.hbm %s146_s2, 32 }
  0x1b   :  { %p84_p8 = scmp.ne.s32.totalorder %s146_s2, %s83_s30  ;;  %p87_p9 = scmp.lt.u32.totalorder %s83_s30, %s146_s2 }
  0x1d   :  { %p89_p10 = pnand %p87_p9, %p84_p8 }
  0x1f   :  { %92 = shalt.err (!%p89_p10)
}
  0x20   :  { %50 = dma.vmem_to_hbm [thread:$0]  %s48_s27, 32, %s146_s2, [#allocation3]  }
  0x21   :  { %95 = dma.done.wait [#allocation3], 32  }
  0x22   :  { %96 = vsyncadd [#allocation3], 4294967264 }
  0x23   :  { %54 = vsyncpa [#allocation3], 1 }
  0x24   :  { %55 = vsyncpa [#allocation4], 1 }

</bundles_post_ra>
